<compile_context>
chip_gen: v7x
topology: tpu7x:2x2x1
jax: 0.10.0
libtpu: 0.0.40
codegen_flags: <defaults>
</compile_context>

<pallas_src>
import jax
import jax.numpy as jnp
import numpy as np
from jax.experimental import pallas as pl
from jax.experimental.pallas import tpu as pltpu


def _attention_kernel(hidden_ref, enc_ref, w_ref, out_ref):
    B, S, Denc = enc_ref.shape
    Ddec = hidden_ref.shape[1]
    Dout = w_ref.shape[1]

    # Static ref slices of the packed weight operand (zero-cost views).
    w_h = w_ref[:Ddec, :]                                  # (Ddec, Dout) bf16
    w_e = w_ref[Ddec:Ddec + Denc, :]                       # (Denc, Dout) bf16
    bias = w_ref[Ddec + Denc, :].astype(jnp.float32)       # (Dout,)
    v = w_ref[Ddec + Denc + 1, :].astype(jnp.float32)      # (Dout,)

    # bf16 MXU inputs, f32 accumulation. Casts are cheap VPU work and keep the
    # per-call wrapper free of extra XLA ops.
    hidden = hidden_ref[...].astype(jnp.bfloat16)          # (B, Ddec)
    # Merge (B, S) onto the sublane axis for a single 2-D MXU matmul; with S a
    # multiple of 8 the f32 reshape is layout-preserving.
    enc2d = enc_ref[...].reshape(B * S, Denc).astype(jnp.bfloat16)

    # Hidden projection with the bias folded in once: (B, Dout) f32.
    hb = jnp.dot(hidden, w_h, preferred_element_type=jnp.float32) + bias[None, :]

    # Encoder projection: (B*S, Dout) -> (B, S, Dout).
    e_proj = jnp.dot(enc2d, w_e, preferred_element_type=jnp.float32)
    e_proj = e_proj.reshape(B, S, Dout)

    # energy = tanh(Linear(cat(hidden, enc)))  -> (B, S, Dout), f32.
    energy = jnp.tanh(e_proj + hb[:, None, :])

    # attention scores = v(energy).squeeze(2)  -> (B, S).
    # TODO(synk): at production Dout, run this contraction on the MXU as
    # energy.reshape(B*S, Dout) @ v[:, None]; at Dout=32 the VALU mul +
    # XLU lane-reduce is negligible (per perf review).
    scores = jnp.sum(energy * v[None, None, :], axis=-1)

    # softmax over src_len (axis=1); approx reciprocal uses the idle EUP slot.
    m = jnp.max(scores, axis=1, keepdims=True)
    e = jnp.exp(scores - m)
    denom = jnp.sum(e, axis=1, keepdims=True)
    out_ref[...] = e * pl.reciprocal(denom, approx=True)


def pack_attention_params(w_attn, b_attn, v_w):
    """One-time, init-time parameter packing. Keep OUT of the per-call path.

    w_attn: (Dout, Ddec + Denc)  -- nn.Linear(enc+dec, dec).weight, where the
            cat order in forward is (hidden, encoder_outputs), so the first
            Ddec input columns act on hidden.
    b_attn: (Dout,)              -- nn.Linear bias.
    v_w:    (1, Dout)            -- nn.Linear(dec, 1, bias=False).weight.

    Returns a single (Ddec + Denc + 2, Dout) bf16 operand:
      rows [0:Ddec]          = W_h^T
      rows [Ddec:Ddec+Denc]  = W_e^T
      row  [-2]              = bias
      row  [-1]              = v
    """
    Dout = w_attn.shape[0]
    w_t = jnp.transpose(w_attn)                                  # (Ddec+Denc, Dout)
    packed = jnp.concatenate(
        [w_t, b_attn.reshape(1, Dout), v_w.reshape(1, Dout)], axis=0)
    return packed.astype(jnp.bfloat16)


def attention_forward(hidden, encoder_outputs, packed_w):
    """hidden: (B, Ddec) f32, encoder_outputs: (B, S, Denc) f32,
    packed_w: (Ddec + Denc + 2, Dout) bf16 from pack_attention_params."""
    B, S, _ = encoder_outputs.shape
    return pl.pallas_call(
        _attention_kernel,
        out_shape=jax.ShapeDtypeStruct((B, S), jnp.float32),
        in_specs=[
            pl.BlockSpec(memory_space=pltpu.MemorySpace.VMEM),
            pl.BlockSpec(memory_space=pltpu.MemorySpace.VMEM),
            pl.BlockSpec(memory_space=pltpu.MemorySpace.VMEM),
        ],
        out_specs=pl.BlockSpec(memory_space=pltpu.MemorySpace.VMEM),
    )(hidden, encoder_outputs, packed_w)


def _reference(hidden, encoder_outputs, w_attn, b_attn, v_w):
    """Pure-JAX f32 mirror of the PyTorch forward for verification."""
    B, S, _ = encoder_outputs.shape
    h_rep = jnp.repeat(hidden[:, None, :], S, axis=1)            # (B, S, Ddec)
    cat = jnp.concatenate([h_rep, encoder_outputs], axis=2)      # (B, S, Ddec+Denc)
    energy = jnp.tanh(jnp.einsum('bsi,oi->bso', cat, w_attn) + b_attn)
    attention = jnp.einsum('bso,o->bs', energy, v_w[0])          # squeeze(2)
    return jax.nn.softmax(attention, axis=1)


if __name__ == "__main__":
    B, S = 2, 8
    enc_hidden_dim, dec_hidden_dim = 32, 32

    key = jax.random.PRNGKey(0)
    k_h, k_e, k_w, k_b, k_v = jax.random.split(key, 5)

    hidden = jax.random.normal(k_h, (B, dec_hidden_dim), dtype=jnp.float32)
    encoder_outputs = jax.random.normal(
        k_e, (B, S, enc_hidden_dim), dtype=jnp.float32)

    # Deterministic parameter init (uniform(-1/sqrt(fan_in), 1/sqrt(fan_in)),
    # matching nn.Linear's default scale).
    fan_in_attn = enc_hidden_dim + dec_hidden_dim
    bound_attn = 1.0 / np.sqrt(fan_in_attn)
    w_attn = jax.random.uniform(k_w, (dec_hidden_dim, fan_in_attn),
                                minval=-bound_attn, maxval=bound_attn,
                                dtype=jnp.float32)
    b_attn = jax.random.uniform(k_b, (dec_hidden_dim,),
                                minval=-bound_attn, maxval=bound_attn,
                                dtype=jnp.float32)
    bound_v = 1.0 / np.sqrt(dec_hidden_dim)
    v_w = jax.random.uniform(k_v, (1, dec_hidden_dim),
                             minval=-bound_v, maxval=bound_v, dtype=jnp.float32)

    # One-time packing (transpose + bias/v fold + bf16 cast) -- NOT per call.
    packed_w = jax.block_until_ready(pack_attention_params(w_attn, b_attn, v_w))

    out = attention_forward(hidden, encoder_outputs, packed_w)
    out = jax.block_until_ready(out)

    ref = _reference(hidden, encoder_outputs, w_attn, b_attn, v_w)
    # bf16 MXU inputs + approx reciprocal -> looser tolerance than pure f32.
    np.testing.assert_allclose(np.asarray(out), np.asarray(ref),
                               rtol=2e-2, atol=2e-2)

    print("KERNEL_OK")
</pallas_src>

<mosaic_0001>
module attributes {stable_mosaic.version = 11 : i64} {
  func.func @_attention_kernel(%arg0: memref<2x32xf32, #tpu.memory_space<vmem>>, %arg1: memref<2x8x32xf32, #tpu.memory_space<vmem>>, %arg2: memref<66x32xbf16, #tpu.memory_space<vmem>>, %arg3: memref<2x8xf32, #tpu.memory_space<vmem>>) attributes {dimension_semantics = [], scalar_prefetch = 0 : i64, scratch_operands = 0 : i64, tpu.core_type = #tpu.core_type<tc>} {
    %c0 = arith.constant 0 : index
    %c0_0 = arith.constant 0 : index
    %0 = vector.load %arg2[%c0, %c0_0] : memref<66x32xbf16, #tpu.memory_space<vmem>>, vector<32x32xbf16>
    %c32 = arith.constant 32 : index
    %c0_1 = arith.constant 0 : index
    %1 = vector.load %arg2[%c32, %c0_1] : memref<66x32xbf16, #tpu.memory_space<vmem>>, vector<32x32xbf16>
    %c64 = arith.constant 64 : index
    %c0_2 = arith.constant 0 : index
    %2 = vector.load %arg2[%c64, %c0_2] : memref<66x32xbf16, #tpu.memory_space<vmem>>, vector<1x32xbf16>
    %3 = vector.shape_cast %2 : vector<1x32xbf16> to vector<32xbf16>
    %4 = arith.extf %3 : vector<32xbf16> to vector<32xf32>
    %c65 = arith.constant 65 : index
    %c0_3 = arith.constant 0 : index
    %5 = vector.load %arg2[%c65, %c0_3] : memref<66x32xbf16, #tpu.memory_space<vmem>>, vector<1x32xbf16>
    %6 = vector.shape_cast %5 : vector<1x32xbf16> to vector<32xbf16>
    %7 = arith.extf %6 : vector<32xbf16> to vector<32xf32>
    %c0_4 = arith.constant 0 : index
    %c0_5 = arith.constant 0 : index
    %8 = vector.load %arg0[%c0_4, %c0_5] : memref<2x32xf32, #tpu.memory_space<vmem>>, vector<2x32xf32>
    %9 = arith.truncf %8 : vector<2x32xf32> to vector<2x32xbf16>
    %c0_6 = arith.constant 0 : index
    %c0_7 = arith.constant 0 : index
    %c0_8 = arith.constant 0 : index
    %10 = vector.load %arg1[%c0_6, %c0_7, %c0_8] : memref<2x8x32xf32, #tpu.memory_space<vmem>>, vector<2x8x32xf32>
    %11 = vector.shape_cast %10 : vector<2x8x32xf32> to vector<16x32xf32>
    %12 = arith.truncf %11 : vector<16x32xf32> to vector<16x32xbf16>
    %cst = arith.constant dense<0.000000e+00> : vector<2x32xf32>
    %13 = tpu.matmul %9, %0, %cst {dimension_numbers = #tpu.dot_dimension_numbers<[1], [0], [0], [1], [0, 0, 1, 1], [], []>} : vector<2x32xbf16>, vector<32x32xbf16>, vector<2x32xf32> -> vector<2x32xf32>
    %14 = vector.shape_cast %4 : vector<32xf32> to vector<1x32xf32>
    %15 = vector.broadcast %14 : vector<1x32xf32> to vector<2x32xf32>
    %16 = arith.addf %13, %15 : vector<2x32xf32>
    %cst_9 = arith.constant dense<0.000000e+00> : vector<16x32xf32>
    %17 = tpu.matmul %12, %1, %cst_9 {dimension_numbers = #tpu.dot_dimension_numbers<[1], [0], [0], [1], [0, 0, 1, 1], [], []>} : vector<16x32xbf16>, vector<32x32xbf16>, vector<16x32xf32> -> vector<16x32xf32>
    %18 = vector.shape_cast %17 : vector<16x32xf32> to vector<2x8x32xf32>
    %19 = vector.shape_cast %16 : vector<2x32xf32> to vector<2x1x32xf32>
    %20 = vector.broadcast %19 : vector<2x1x32xf32> to vector<2x8x32xf32>
    %21 = arith.addf %18, %20 : vector<2x8x32xf32>
    %22 = math.tanh %21 : vector<2x8x32xf32>
    %23 = vector.shape_cast %7 : vector<32xf32> to vector<1x1x32xf32>
    %24 = vector.broadcast %23 : vector<1x1x32xf32> to vector<2x8x32xf32>
    %25 = arith.mulf %22, %24 : vector<2x8x32xf32>
    %cst_10 = arith.constant dense<0.000000e+00> : vector<2x8xf32>
    %26 = vector.multi_reduction <add>, %25, %cst_10 [2] : vector<2x8x32xf32> to vector<2x8xf32>
    %cst_11 = arith.constant dense<0xFF800000> : vector<2xf32>
    %27 = vector.multi_reduction <maximumf>, %26, %cst_11 [1] : vector<2x8xf32> to vector<2xf32>
    %28 = vector.shape_cast %27 : vector<2xf32> to vector<2x1xf32>
    %29 = vector.broadcast %28 : vector<2x1xf32> to vector<2x8xf32>
    %30 = arith.subf %26, %29 : vector<2x8xf32>
    %31 = math.exp %30 : vector<2x8xf32>
    %cst_12 = arith.constant dense<0.000000e+00> : vector<2xf32>
    %32 = vector.multi_reduction <add>, %31, %cst_12 [1] : vector<2x8xf32> to vector<2xf32>
    %33 = vector.shape_cast %32 : vector<2xf32> to vector<2x1xf32>
    %34 = tpu.reciprocal %33 {approx = true} : vector<2x1xf32> -> vector<2x1xf32>
    %35 = vector.broadcast %34 : vector<2x1xf32> to vector<2x8xf32>
    %36 = arith.mulf %31, %35 : vector<2x8xf32>
    %c0_13 = arith.constant 0 : index
    %c0_14 = arith.constant 0 : index
    %37 = vector.load %arg3[%c0_13, %c0_14] : memref<2x8xf32, #tpu.memory_space<vmem>>, vector<2x8xf32>
    tpu.vector_store %arg3[%c0_13, %c0_14], %36 {strides = array<i32>} : memref<2x8xf32, #tpu.memory_space<vmem>>, vector<2x8xf32>,
    return
  }
}

</mosaic_0001>

<bundles_post_ra>
// kernel: tpu_custom_call.1
= control target key start
LH: loop header
LB: loop body
LE: loop exit
PB: predicated region body
PF: predicated region fallthrough
CT: control target
= control target key end

     0   :  { %v373_v1 = vmov 0.0   ;;  %vm374_vm0 = vmmov 0   ;;  %s451_s0 = inlined_call_operand.vmem [shape: f32[2,32], index: 0, kind: input, shape index: {}]   ;;  %s452_s1 = inlined_call_operand.vmem [shape: f32[2,8,32], index: 1, kind: input, shape index: {}]   ;;  %s453_s2 = inlined_call_operand.vmem [shape: bf16[66,32], index: 2, kind: input, shape index: {}]   ;;  %s454_s3 = inlined_call_operand.hbm [shape: f32[2,8], index: 3, kind: output, shape index: {}]  }
   0x1   :  { %v335_v0 = vld [vmem:[%s453_s2] sm:$0xff]   ;;  %312 = vmatprep.subr.bf16.mxu0 %v373_v1  ;;  %v336_v2 = vld [vmem:[%s453_s2 + $0x8] sm:$0xff]   ;;  %320 = vmatprep.subr.bf16.mxu1 %v373_v1  ;;  %v337_v3 = vld [vmem:[%s453_s2 + $0x10] sm:$0xff]  }
   0x2   :  { %313 = vmatpush3.bf16.msra.mxu0 %v335_v0  ;;  %316 = vmatprep.mubr.msk.bf16.mxu0 %vm374_vm0, %v373_v1  ;;  %v26_v4 = vld [vmem:[%s451_s0] sm:$0x3]  ;;  %v338_v5 = vld [vmem:[%s453_s2 + $0x18] sm:$0xff]   ;;  %v29_v7 = vld [vmem:[%s452_s1 + $0x8] sm:$0xff] }
   0x3   :  { %314 = vmatprep.subr.bf16.mxu0 %v373_v1  ;;  %324 = vmatprep.mubr.msk.bf16.mxu1 %vm374_vm0, %v373_v1  ;;  %v28_v6 = vld [vmem:[%s452_s1] sm:$0xff]  ;;  %v27_v8 = vpack.c.bf16 %v26_v4, %v26_v4 }
   0x4   :  { %321 = vmatpush3.bf16.msra.mxu1 %v337_v3 }
   0x5   :  { %322 = vmatprep.subr.bf16.mxu1 %v373_v1 }
   0x6   :  { %8 = vsyncpa [#allocation3], 0  ;;  %315 = vmatpush3.bf16.msra.mxu0 %v336_v2  ;;  %vm47_vm1 = vcmask 261120   ;;  %v30_v9 = vpack.c.bf16 %v29_v7, %v28_v6  ;;  %v31_v10 = vlaneseq  ;;  %v24_v12 = vld [vmem:[%s453_s2 + $0x20] sm:$0x1]  ;;  %vm208_vm2 = vcmask 1041409  }
   0x7   :  { %v375_v13 = vmov 1966171168   ;;  %v25_v15 = vunpack.c.l.bf16 %v24_v12  ;;  %vm211_vm3 = vcmask 58368   ;;  %v376_v53 = vmov 0   ;;  %s377_s1 = smov [#allocation2]  }
   0x8   :  { %323 = vmatpush3.bf16.msra.mxu1 %v338_v5  ;;  %v32_v11 = vshrl.u32 %v31_v10, 7  ;;  %v149_v14 = vunpack.c.l.s4 %v375_v13  ;;  %v199_v45 = vand.u32 127, %v31_v10  ;;  %334 = vset.pattern.permute.xlu0 %v376_v53  ;;  %s292_s2 = sshll.u32 %s377_s1, 4  ;;  %s293_s2 = int_to_ptr.vmem [resolvable:$true] %s292_s2 }
   0x9   :  { %317 = vmatmul.mubr.msk.bf16.vlgmr.msra.gmra.mrb[0].mxu0 %vm47_vm1, %v27_v8  ;;  %333 = vset.pattern.permute.xlu1 %v376_v53  ;;  %s349_s27 = scalar_lea.vmem %s293_s2, 32  ;;  %p354_p1 = scmp.lt.s32.totalorder %s293_s2, %s293_s2 }
   0xa   :  { %v424_v16 = vsub.s32 0, %v32_v11  ;;  %v150_v17 = vunpack.c.0.s8 %v149_v14  ;;  %v186_v37 = vsub.s32 1, %v32_v11  ;;  %v202_v47 = vsub.s32 %v199_v45, %v32_v11  ;;  %p350_p0 = scmp.ne.s32.totalorder %s293_s2, %s349_s27  ;;  %p355_p2 = scmp.lt.s32.totalorder %s349_s27, %s349_s27 }
   0xb   :  { %325 = vmatmul.mubr.msk.bf16.vlgmr.msra.gmra.mrb[0].mxu1 %vm47_vm1, %v30_v9 }
   0xc   :  { %v34_v18 = vrot.slane %v25_v15, %v424_v16  ;;  %v153_v19 = vsub.s32 %v150_v17, %v32_v11  ;;  %v187_v38 = vrot.slane %v25_v15, %v186_v37  ;;  %p356_p3 = por %p355_p2, %p354_p1 }
   0xe   :  { %p357_p4 = pnand %p356_p3, %p350_p0 }
  0xdc   :  { %v85_v20 = vpop.f32.mrb[0].mxu0 }
  0xdd   :  { %v86_v21 = vadd.f32 %v85_v20, %v34_v18  ;;  %v318_v22 = vpop.f32.mrb[1].mxu0 }
  0xde   :  { %v88_v23 = vpop.f32.mrb[2].mxu0  ;;  %v140_v24 = vpop.f32.mrb[0].mxu1 }
  0xdf   :  { %v154_v25 = vrot.slane %v86_v21, %v153_v19  ;;  %v319_v26 = vpop.f32.mrb[3].mxu0  ;;  %v326_v27 = vpop.f32.mrb[1].mxu1 }
  0xe0   :  { %v143_v28 = vpop.f32.mrb[2].mxu1 }
  0xe1   :  { %v155_v29 = vcombine.high %v154_v25, %v154_v25  ;;  %v162_v30 = vrot.slane %v154_v25, %v153_v19  ;;  %v327_v31 = vpop.f32.mrb[3].mxu1 }
  0xe3   :  { %v173_v32 = vrot.slane %v162_v30, %v424_v16  ;;  %v169_v33 = vrot.slane %v155_v29, %v153_v19 }
  0xe5   :  { %v180_v34 = vadd.f32 %v173_v32, %v140_v24  ;;  %v177_v35 = vrot.slane %v169_v33, %v424_v16 }
  0xe7   :  { %339 = vtanh.f32 %v180_v34  ;;  %v181_v36 = vadd.f32 %v177_v35, %v143_v28 }
  0xe9   :  { %341 = vtanh.f32 %v181_v36 }
  0xf1   :  { %v340_v39 = vpop.eup %339 }
  0xf2   :  { %v188_v40 = vmul.f32 %v340_v39, %v187_v38 }
  0xf3   :  { %v342_v41 = vpop.eup %341 }
  0xf4   :  { %v190_v42 = vsel %vm47_vm1, %v188_v40, 0.0  ;;  %v189_v43 = vmul.f32 %v342_v41, %v187_v38 }
  0xf5   :  { %191 = vadd.xlane.f32.xlu0 %v190_v42 }
  0xf6   :  { %v193_v44 = vsel %vm47_vm1, %v189_v43, 0.0 }
  0xf9   :  { %194 = vadd.xlane.f32.xlu0 %v193_v44 }
 0x182   :  { %v192_v46 = vpop.xlane.xlu0 %191 }
 0x183   :  { %v203_v49 = vrot.slane %v192_v46, %v202_v47 }
 0x186   :  { %v195_v48 = vpop.xlane.xlu0 %194 }
 0x187   :  { %v207_v50 = vrot.slane %v195_v48, %v202_v47 }
 0x189   :  { %v209_v51 = vsel %vm208_vm2, %v207_v50, %v203_v49 }
 0x18a   :  { %v212_v52 = vsel %vm211_vm3, %v209_v51, -inf }
 0x18b   :  { %213 = vmax.xlane.f32.xlu1 %v212_v52 }
 0x218   :  { %v214_v54 = vpop.xlane.xlu1 %213 }
 0x219   :  { %v219_v55 = vrot.slane %v214_v54, %v424_v16  ;;  %v223_v56 = vrot.slane %v214_v54, %v186_v37 }
 0x21b   :  { %v226_v57 = vsub.f32 %v192_v46, %v219_v55  ;;  %v227_v58 = vsub.f32 %v195_v48, %v223_v56 }
 0x21d   :  { %v228_v59 = vmul.f32 1.442695, %v226_v57  ;;  %v230_v60 = vmul.f32 1.442695, %v227_v58 }
 0x21f   :  { %343 = vpow2.f32 %v228_v59 }
 0x220   :  { %345 = vpow2.f32 %v230_v60 }
 0x229   :  { %v344_v61 = vpop.eup %343 }
 0x22a   :  { %v346_v62 = vpop.eup %345  ;;  %235 = vperm.xlu1 %333, %v344_v61  }
 0x22b   :  { %238 = vperm.xlu0 %334, %v346_v62  }
 0x2a9   :  { %v236_v63 = vpop.permute.xlu1 %235 }
 0x2aa   :  { %v239_v0 = vpop.permute.xlu0 %238  ;;  %v243_v1 = vrot.slane %v236_v63, %v202_v47 }
 0x2ab   :  { %v247_v2 = vrot.slane %v239_v0, %v202_v47 }
 0x2ad   :  { %v248_v3 = vsel %vm208_vm2, %v247_v2, %v243_v1 }
 0x2ae   :  { %v250_v4 = vsel %vm211_vm3, %v248_v3, 0.0 }
 0x2af   :  { %251 = vadd.xlane.f32.xlu1 %v250_v4 }
 0x33c   :  { %v252_v5 = vpop.xlane.xlu1 %251 }
 0x33d   :  { %347 = vrcp.f32 %v252_v5 }
 0x347   :  { %v348_v6 = vpop.eup %347 }
 0x348   :  { %v258_v7 = vrot.slane %v348_v6, %v424_v16  ;;  %v262_v9 = vrot.slane %v348_v6, %v186_v37 }
 0x34a   :  { %v265_v8 = vmul.f32 %v344_v61, %v258_v7  ;;  %v266_v10 = vmul.f32 %v346_v62, %v262_v9 }
 0x34c   :  { %270 = vperm.xlu0 %334, %v265_v8  }
 0x350   :  { %273 = vperm.xlu0 %334, %v266_v10  }
 0x3cb   :  { %v271_v11 = vpop.permute.xlu0 %270 }
 0x3cc   :  { %v278_v13 = vrot.slane %v271_v11, %v202_v47 }
 0x3cf   :  { %v274_v12 = vpop.permute.xlu0 %273 }
 0x3d0   :  { %v282_v14 = vrot.slane %v274_v12, %v202_v47 }
 0x3d2   :  { %v283_v15 = vsel %vm208_vm2, %v282_v14, %v278_v13 }
 0x3d3   :  { %285 = vst.msk [vmem:[#allocation2] sm:$0x3] %vm211_vm3, %v283_v15 }
 0x3d4   :  { %360 = shalt.err (!%p357_p4)
}
 0x3d5   :  { %s361_s30 = scalar_lea.hbm %s454_s3, 32 }
 0x3d6   :  { %p362_p5 = scmp.ne.s32.totalorder %s454_s3, %s361_s30  ;;  %p365_p6 = scmp.lt.u32.totalorder %s361_s30, %s454_s3 }
 0x3d8   :  { %p367_p7 = pnand %p365_p6, %p362_p5 }
 0x3da   :  { %370 = shalt.err (!%p367_p7)
}
 0x3db   :  { %295 = dma.vmem_to_hbm [thread:$0]  %s293_s2, 32, %s454_s3, [#allocation3]  }
 0x3dc   :  { %371 = dma.done.wait [#allocation3], 32  }
 0x3dd   :  { %372 = vsyncadd [#allocation3], 4294967264 }
 0x3de   :  { %299 = vsyncpa [#allocation3], 1 }

</bundles_post_ra>
